<compile_context>
chip_gen: v7x
topology: tpu7x:2x2x1
jax: 0.10.0
libtpu: 0.0.40
codegen_flags: <defaults>
</compile_context>

<pallas_src>
import numpy as np
import jax
import jax.numpy as jnp
from jax.experimental import pallas as pl
from jax.experimental.pallas import tpu as pltpu

LANES = 128
SUBLANES = 8
N_VERTS = 25193


def _relu_kernel(x_ref, o_ref):
    # Elementwise ReLU over the entire lane-dense (rows, 128) VMEM slab.
    o_ref[...] = jnp.maximum(x_ref[...], jnp.float32(0.0))


def pad_to_slab(disp):
    """Pad the (N, 1) parameter ONCE into a lane-dense (rows, 128) f32 slab.

    Padding is only to the minimal (8, 128)-aligned size.  Zero padding is
    safe because relu(0) = 0 and the pad region is dropped on output.
    Returns (slab, n) where n is the true vertex count.
    """
    n = disp.shape[0]
    flat = disp.reshape(-1).astype(jnp.float32)
    tile = SUBLANES * LANES  # 1024
    n_pad = ((n + tile - 1) // tile) * tile
    flat = jnp.pad(flat, (0, n_pad - n))
    return flat.reshape(n_pad // LANES, LANES), n


def clothes_displacement_forward(slab, n):
    """forward(): distance = relu(disp).  Returns (N, 1) float32."""
    rows = slab.shape[0]
    out_slab = pl.pallas_call(
        _relu_kernel,
        out_shape=jax.ShapeDtypeStruct((rows, LANES), jnp.float32),
        # Whole array as a single block resident in VMEM (no grid, no
        # pipelining machinery needed for ~100 KiB of data).
        in_specs=[pl.BlockSpec(memory_space=pltpu.MemorySpace.VMEM)],
        out_specs=pl.BlockSpec(memory_space=pltpu.MemorySpace.VMEM),
        cost_estimate=pl.CostEstimate(
            flops=rows * LANES,
            transcendentals=0,
            bytes_accessed=2 * rows * LANES * 4,
        ),
    )(slab)
    # Keep the module's (N, 1) output signature.  If a downstream consumer can
    # take the lane-dense slab directly, this reshape/slice should be fused
    # into that consumer instead.
    return out_slab.reshape(-1)[:n].reshape(n, 1)


def init_clothes_displacement_params(key,
                                     size=(N_VERTS, 1),
                                     initial_offset=0.05,
                                     perturb_range=0.01,
                                     target_fraction=0.6):
    """Deterministic synthetic re-implementation of ClothesDisplacement.__init__.

    The real module selects `target_ids` from SMPL-X semantic segmentation
    files on disk; here we synthesize a deterministic subset of vertex ids.
    # TODO(synk): real dense_segs/segmentation target ids come from .pkl/.npy assets.
    """
    n = size[0]
    disp = jnp.zeros(size, dtype=jnp.float32) + 1e-15

    k_ids, k_perturb = jax.random.split(key)
    n_target = int(n * target_fraction)
    perm = jax.random.permutation(k_ids, n)
    target_ids = perm[:n_target]

    # add_perturbed_offset: ones*initial_offset + (rand*2 - 1)*perturb_range
    perturbed = (jnp.ones((n_target, size[1]), jnp.float32) * initial_offset
                 + (jax.random.uniform(k_perturb, (n_target, size[1]),
                                       jnp.float32) * 2.0 - 1.0) * perturb_range)
    disp = disp.at[target_ids].set(perturbed)
    return disp


if __name__ == "__main__":
    key = jax.random.PRNGKey(0)
    # module default: size=(25193, 1), clothes_type='overall'
    disp = init_clothes_displacement_params(key, size=(N_VERTS, 1),
                                            initial_offset=0.05,
                                            perturb_range=0.01)

    # Pad once at init; the forward pass works on the persistent slab.
    slab, n = pad_to_slab(disp)

    out = clothes_displacement_forward(slab, n)
    out = jax.block_until_ready(out)

    # reference check against plain-JAX relu
    ref = jnp.maximum(disp, 0.0)
    np.testing.assert_allclose(np.asarray(out), np.asarray(ref), rtol=0, atol=0)
    assert out.shape == (N_VERTS, 1) and out.dtype == jnp.float32

    print("KERNEL_OK")
</pallas_src>

<mosaic_0001>
module attributes {stable_mosaic.version = 11 : i64} {
  func.func @_relu_kernel(%arg0: memref<200x128xf32, #tpu.memory_space<vmem>>, %arg1: memref<200x128xf32, #tpu.memory_space<vmem>>) attributes {dimension_semantics = [], scalar_prefetch = 0 : i64, scratch_operands = 0 : i64, tpu.core_type = #tpu.core_type<tc>} {
    %c0 = arith.constant 0 : index
    %c0_0 = arith.constant 0 : index
    %0 = vector.load %arg0[%c0, %c0_0] : memref<200x128xf32, #tpu.memory_space<vmem>>, vector<200x128xf32>
    %cst = arith.constant 0.000000e+00 : f32
    %1 = vector.broadcast %cst : f32 to vector<200x128xf32>
    %2 = arith.maximumf %0, %1 : vector<200x128xf32>
    %c0_1 = arith.constant 0 : index
    %c0_2 = arith.constant 0 : index
    %3 = vector.load %arg1[%c0_1, %c0_2] : memref<200x128xf32, #tpu.memory_space<vmem>>, vector<200x128xf32>
    tpu.vector_store %arg1[%c0_1, %c0_2], %2 {strides = array<i32>} : memref<200x128xf32, #tpu.memory_space<vmem>>, vector<200x128xf32>,
    return
  }
}

</mosaic_0001>

<bundles_post_ra>
// kernel: tpu_custom_call.1
= control target key start
LH: loop header
LB: loop body
LE: loop exit
PB: predicated region body
PF: predicated region fallthrough
CT: control target
= control target key end

     0   :  { %6 = vsyncpa [#allocation3], 0  ;;  %s214_s0 = inlined_call_operand.hbm [shape: f32[200,128], index: 0, kind: input, shape index: {}]   ;;  %s215_s1 = inlined_call_operand.hbm [shape: f32[200,128], index: 1, kind: output, shape index: {}]  }
   0x1   :  { %7 = vsyncpa [#allocation4], 0  ;;  %s167_s6 = smov [#allocation2]   ;;  %s119_s10 = scalar_lea.hbm %s214_s0, 3200 }
   0x2   :  { %s13_s7 = sshll.u32 %s167_s6, 4  ;;  %p120_p0 = scmp.ne.s32.totalorder %s214_s0, %s119_s10  ;;  %s14_s7 = int_to_ptr.vmem [resolvable:$true] %s13_s7 }
   0x3   :  { %p123_p1 = scmp.lt.u32.totalorder %s119_s10, %s214_s0 }
   0x5   :  { %p125_p2 = pnand %p123_p1, %p120_p0 }
   0x7   :  { %128 = shalt.err (!%p125_p2)
}
   0x8   :  { %s129_s15 = scalar_lea.vmem %s14_s7, 3200  ;;  %p134_p4 = scmp.lt.s32.totalorder %s14_s7, %s14_s7 }
   0x9   :  { %p130_p3 = scmp.ne.s32.totalorder %s14_s7, %s129_s15  ;;  %p135_p5 = scmp.lt.s32.totalorder %s129_s15, %s129_s15 }
   0xb   :  { %p136_p6 = por %p135_p5, %p134_p4 }
   0xd   :  { %p137_p7 = pnand %p136_p6, %p130_p3 }
   0xf   :  { %140 = shalt.err (!%p137_p7)
}
  0x10   :  { %s168_s16 = smov 128   ;;  %s169_s17 = smov 8  }
  0x11   :  { %19 = dma.hbm_to_vmem [thread:$0]  %s214_s0, 3200, %s14_s7, [#allocation3], %s168_s16, %s168_s16, %s169_s17  }
  0x12   :  { %163 = dma.done.wait [#allocation3], 3200  }
  0x13   :  { %164 = vsyncadd [#allocation3], 4294964096  ;;  %v23_v0 = vld [vmem:[#allocation2] sm:$0xff]  ;;  %v24_v1 = vld [vmem:[#allocation2 + $0x8] sm:$0xff]  ;;  %s170_s20 = smov [#allocation5]  }
  0x14   :  { %v25_v2 = vld [vmem:[#allocation2 + $0x10] sm:$0xff]  ;;  %s196_s21 = sshll.u32 %s170_s20, 4  ;;  %v48_v3 = vmax.f32 %v23_v0, 0.0  ;;  %v49_v4 = vmax.f32 %v24_v1, 0.0  ;;  %v26_v6 = vld [vmem:[#allocation2 + $0x18] sm:$0xff]  ;;  %v27_v7 = vld [vmem:[#allocation2 + $0x20] sm:$0xff]  ;;  %s104_s21 = int_to_ptr.vmem [resolvable:$true] %s196_s21 }
  0x15   :  { %v50_v5 = vmax.f32 %v25_v2, 0.0  ;;  %v28_v8 = vld [vmem:[#allocation2 + $0x28] sm:$0xff]  ;;  %v51_v9 = vmax.f32 %v26_v6, 0.0  ;;  %v52_v10 = vmax.f32 %v27_v7, 0.0  ;;  %v29_v12 = vld [vmem:[#allocation2 + $0x30] sm:$0xff]  ;;  %v30_v13 = vld [vmem:[#allocation2 + $0x38] sm:$0xff]  ;;  %p146_p9 = scmp.lt.s32.totalorder %s104_s21, %s104_s21 }
  0x16   :  { %v53_v11 = vmax.f32 %v28_v8, 0.0  ;;  %v31_v14 = vld [vmem:[#allocation2 + $0x40] sm:$0xff]  ;;  %73 = vst [vmem:[#allocation5] sm:$0xff] %v48_v3  ;;  %74 = vst [vmem:[#allocation5 + $0x8] sm:$0xff] %v49_v4  ;;  %v54_v15 = vmax.f32 %v29_v12, 0.0  ;;  %v55_v16 = vmax.f32 %v30_v13, 0.0 }
  0x17   :  { %75 = vst [vmem:[#allocation5 + $0x10] sm:$0xff] %v50_v5  ;;  %v56_v17 = vmax.f32 %v31_v14, 0.0  ;;  %v32_v18 = vld [vmem:[#allocation2 + $0x48] sm:$0xff]  ;;  %v33_v19 = vld [vmem:[#allocation2 + $0x50] sm:$0xff]  ;;  %v34_v20 = vld [vmem:[#allocation2 + $0x58] sm:$0xff]  ;;  %s141_s0 = scalar_lea.vmem %s104_s21, 3200 }
  0x18   :  { %76 = vst [vmem:[#allocation5 + $0x18] sm:$0xff] %v51_v9  ;;  %77 = vst [vmem:[#allocation5 + $0x20] sm:$0xff] %v52_v10  ;;  %v57_v21 = vmax.f32 %v32_v18, 0.0  ;;  %v58_v22 = vmax.f32 %v33_v19, 0.0  ;;  %v59_v23 = vmax.f32 %v34_v20, 0.0  ;;  %v35_v24 = vld [vmem:[#allocation2 + $0x60] sm:$0xff]  ;;  %p142_p8 = scmp.ne.s32.totalorder %s104_s21, %s141_s0  ;;  %p147_p10 = scmp.lt.s32.totalorder %s141_s0, %s141_s0 }
  0x19   :  { %78 = vst [vmem:[#allocation5 + $0x28] sm:$0xff] %v53_v11  ;;  %v36_v25 = vld [vmem:[#allocation2 + $0x68] sm:$0xff]  ;;  %v37_v26 = vld [vmem:[#allocation2 + $0x70] sm:$0xff]  ;;  %79 = vst [vmem:[#allocation5 + $0x30] sm:$0xff] %v54_v15  ;;  %v60_v27 = vmax.f32 %v35_v24, 0.0 }
  0x1a   :  { %80 = vst [vmem:[#allocation5 + $0x38] sm:$0xff] %v55_v16  ;;  %81 = vst [vmem:[#allocation5 + $0x40] sm:$0xff] %v56_v17  ;;  %v61_v28 = vmax.f32 %v36_v25, 0.0  ;;  %v62_v29 = vmax.f32 %v37_v26, 0.0  ;;  %v38_v30 = vld [vmem:[#allocation2 + $0x78] sm:$0xff]  ;;  %v39_v31 = vld [vmem:[#allocation2 + $0x80] sm:$0xff]  ;;  %p148_p11 = por %p147_p10, %p146_p9 }
  0x1b   :  { %v40_v32 = vld [vmem:[#allocation2 + $0x88] sm:$0xff]  ;;  %82 = vst [vmem:[#allocation5 + $0x48] sm:$0xff] %v57_v21  ;;  %83 = vst [vmem:[#allocation5 + $0x50] sm:$0xff] %v58_v22  ;;  %v63_v33 = vmax.f32 %v38_v30, 0.0  ;;  %v64_v34 = vmax.f32 %v39_v31, 0.0  ;;  %v41_v36 = vld [vmem:[#allocation2 + $0x90] sm:$0xff] }
  0x1c   :  { %84 = vst [vmem:[#allocation5 + $0x58] sm:$0xff] %v59_v23  ;;  %v65_v35 = vmax.f32 %v40_v32, 0.0  ;;  %v42_v37 = vld [vmem:[#allocation2 + $0x98] sm:$0xff]  ;;  %v43_v38 = vld [vmem:[#allocation2 + $0xa0] sm:$0xff]  ;;  %85 = vst [vmem:[#allocation5 + $0x60] sm:$0xff] %v60_v27  ;;  %v66_v39 = vmax.f32 %v41_v36, 0.0  ;;  %p149_p12 = pnand %p148_p11, %p142_p8 }
  0x1d   :  { %86 = vst [vmem:[#allocation5 + $0x68] sm:$0xff] %v61_v28  ;;  %87 = vst [vmem:[#allocation5 + $0x70] sm:$0xff] %v62_v29  ;;  %v67_v40 = vmax.f32 %v42_v37, 0.0  ;;  %v68_v41 = vmax.f32 %v43_v38, 0.0  ;;  %v44_v42 = vld [vmem:[#allocation2 + $0xa8] sm:$0xff]  ;;  %v45_v43 = vld [vmem:[#allocation2 + $0xb0] sm:$0xff] }
  0x1e   :  { %v46_v44 = vld [vmem:[#allocation2 + $0xb8] sm:$0xff]  ;;  %88 = vst [vmem:[#allocation5 + $0x78] sm:$0xff] %v63_v33  ;;  %89 = vst [vmem:[#allocation5 + $0x80] sm:$0xff] %v64_v34  ;;  %v69_v45 = vmax.f32 %v44_v42, 0.0  ;;  %v70_v46 = vmax.f32 %v45_v43, 0.0  ;;  %v47_v48 = vld [vmem:[#allocation2 + $0xc0] sm:$0xff] }
  0x1f   :  { %90 = vst [vmem:[#allocation5 + $0x88] sm:$0xff] %v65_v35  ;;  %v71_v47 = vmax.f32 %v46_v44, 0.0  ;;  %91 = vst [vmem:[#allocation5 + $0x90] sm:$0xff] %v66_v39  ;;  %v72_v49 = vmax.f32 %v47_v48, 0.0 }
  0x20   :  { %92 = vst [vmem:[#allocation5 + $0x98] sm:$0xff] %v67_v40  ;;  %93 = vst [vmem:[#allocation5 + $0xa0] sm:$0xff] %v68_v41 }
  0x21   :  { %94 = vst [vmem:[#allocation5 + $0xa8] sm:$0xff] %v69_v45  ;;  %95 = vst [vmem:[#allocation5 + $0xb0] sm:$0xff] %v70_v46 }
  0x22   :  { %96 = vst [vmem:[#allocation5 + $0xb8] sm:$0xff] %v71_v47  ;;  %97 = vst [vmem:[#allocation5 + $0xc0] sm:$0xff] %v72_v49 }
  0x23   :  { %152 = shalt.err (!%p149_p12)
}
  0x24   :  { %s153_s24 = scalar_lea.hbm %s215_s1, 3200 }
  0x25   :  { %p154_p13 = scmp.ne.s32.totalorder %s215_s1, %s153_s24  ;;  %p157_p0 = scmp.lt.u32.totalorder %s153_s24, %s215_s1 }
  0x27   :  { %p159_p1 = pnand %p157_p0, %p154_p13 }
  0x29   :  { %162 = shalt.err (!%p159_p1)
}
  0x2a   :  { %109 = dma.vmem_to_hbm [thread:$0]  %s104_s21, 3200, %s215_s1, [#allocation4], %s168_s16, %s168_s16, %s169_s17  }
  0x2b   :  { %165 = dma.done.wait [#allocation4], 3200  }
  0x2c   :  { %166 = vsyncadd [#allocation4], 4294964096 }
  0x2d   :  { %113 = vsyncpa [#allocation3], 1 }
  0x2e   :  { %114 = vsyncpa [#allocation4], 1 }

</bundles_post_ra>
